<compile_context>
chip_gen: v7x
topology: tpu7x:2x2x1
jax: 0.10.0
libtpu: 0.0.40
codegen_flags: <defaults>
</compile_context>

<pallas_src>
import functools

import jax
import jax.numpy as jnp
from jax.experimental import pallas as pl
from jax.experimental.pallas import tpu as pltpu


def _round_up(x, m):
    return ((x + m - 1) // m) * m


def _resident_spec(block_shape, index_map):
    """BlockSpec for a grid-constant block; single-buffered when supported."""
    try:
        return pl.BlockSpec(block_shape, index_map, pipeline_mode=pl.Buffered(1))
    except Exception:  # JAX build without pipeline_mode / Buffered
        return pl.BlockSpec(block_shape, index_map)


def _vmem_ceiling_bytes():
    """~80% of this generation's per-core VMEM (v5e/v6e: 128 MiB, v7x: 64 MiB)."""
    cap = None
    try:
        cap = int(getattr(pltpu.get_tpu_info(), "vmem_capacity_bytes", 0)) or None
    except Exception:
        cap = None
    if cap is None:
        cap = 64 * 1024 * 1024  # conservative default (v7x per-core VMEM)
    return max(16 * 1024 * 1024, int(cap * 0.8))


def _self_output_kernel(seed_ref, x_ref, wt_ref, b_ref, o_ref, *,
                        dropout_prob, tm, hidden):
    # x_ref: (tm, H) activations; wt_ref: (H, H) pre-transposed weight (in, out);
    # b_ref: (1, H) f32 bias; o_ref: (tm, H).
    # Plain NN matmul on the MXU, f32 accumulation; exact f32 path when operands are f32.
    prec = jax.lax.Precision.HIGHEST if x_ref.dtype == jnp.float32 else None
    y = jnp.dot(x_ref[...], wt_ref[...],
                preferred_element_type=jnp.float32, precision=prec)
    y = y + b_ref[...]  # f32 bias add (v5e-friendly)

    if dropout_prob > 0.0:
        # Inverted dropout from a stateless murmur3-style hash of the GLOBAL element
        # coordinate and the seed: works on every backend (no TPU-only PRNG primitive)
        # and is invariant to the tile size / grid layout.
        row = jax.lax.broadcasted_iota(jnp.int32, y.shape, 0) + pl.program_id(0) * tm
        col = jax.lax.broadcasted_iota(jnp.int32, y.shape, 1)
        h = (row * hidden + col).astype(jnp.uint32)
        h = h ^ (seed_ref[0].astype(jnp.uint32) * jnp.uint32(0x9E3779B9))
        h = h ^ (h >> 16)
        h = h * jnp.uint32(0x85EBCA6B)
        h = h ^ (h >> 13)
        h = h * jnp.uint32(0xC2B2AE35)
        h = h ^ (h >> 16)
        # Top 24 bits -> uniform in [0, 1); keep with probability (1 - p).
        u = (h >> 8).astype(jnp.int32).astype(jnp.float32) * jnp.float32(1.0 / (1 << 24))
        keep = u >= jnp.float32(dropout_prob)
        y = jnp.where(keep, y * jnp.float32(1.0 / (1.0 - dropout_prob)), jnp.float32(0.0))

    o_ref[...] = y.astype(o_ref.dtype)


def timesformer_self_output(hidden_states, weight, bias, *,
                            dropout_prob=0.0, dropout_seed=0,
                            tm=1024, matmul_dtype=None):
    """hidden_states: (B, S, H); weight: (H, H) PyTorch (out, in) layout; bias: (H,)."""
    B, S, H = hidden_states.shape
    assert weight.shape == (H, H), weight.shape
    assert bias.shape == (H,), bias.shape
    assert 0.0 <= dropout_prob < 1.0, dropout_prob

    out_dtype = hidden_states.dtype
    if matmul_dtype is None:
        # bf16 MXU operands (f32 accumulation) for f32 activations: ~4x MXU rate on
        # v6e/v7x, bf16-native on v5e, and half the x HBM read.  Pass jnp.float32
        # explicitly when exact f32 results are required.
        matmul_dtype = (jnp.bfloat16 if hidden_states.dtype == jnp.float32
                        else hidden_states.dtype)

    M = B * S
    x_bytes = jnp.dtype(matmul_dtype).itemsize
    o_bytes = jnp.dtype(out_dtype).itemsize

    # Row tile: sublane-aligned for the operand dtype, capped so the grid has >= 2 steps
    # (both v7x TensorCores get work, DMA pipelining engages), multiple of 256 when big.
    sub = 8 * max(1, 4 // x_bytes)                    # 8 (f32), 16 (bf16), 32 (8-bit)
    tm_eff = min(tm, _round_up(M, sub))
    if M > sub:
        tm_eff = min(tm_eff, _round_up(pl.cdiv(M, 2), sub))
    if tm_eff >= 256:
        tm_eff = (tm_eff // 256) * 256
    else:
        tm_eff = _round_up(tm_eff, sub)
    grid = (pl.cdiv(M, tm_eff),)                      # ragged edge block handled by Pallas

    x2d = hidden_states.reshape(M, H).astype(matmul_dtype)
    w_t = jnp.transpose(weight).astype(matmul_dtype)  # one O(H^2) transpose, amortized
    b2d = bias.astype(jnp.float32).reshape(1, H)
    seed = jnp.asarray([dropout_seed], dtype=jnp.int32)  # scalar-prefetch (SMEM)

    # VMEM budget: double-buffered x/out tiles + single-buffered resident weight/bias
    # + f32 accumulator + dropout temporaries, with headroom, capped per generation.
    vmem_needed = (2 * tm_eff * H * x_bytes
                   + 2 * tm_eff * H * o_bytes
                   + H * H * x_bytes
                   + H * 4
                   + tm_eff * H * 4
                   + (tm_eff * H * 8 if dropout_prob > 0.0 else 0))
    vmem_limit = int(min(max(int(vmem_needed * 1.5), 16 * 1024 * 1024),
                         _vmem_ceiling_bytes()))

    cost = pl.CostEstimate(
        flops=2 * M * H * H,
        transcendentals=0,
        bytes_accessed=M * H * (x_bytes + o_bytes) + H * H * x_bytes + H * 4,
    )

    kernel = functools.partial(_self_output_kernel,
                               dropout_prob=float(dropout_prob),
                               tm=tm_eff, hidden=H)

    out2d = pl.pallas_call(
        kernel,
        out_shape=jax.ShapeDtypeStruct((M, H), out_dtype),
        grid_spec=pltpu.PrefetchScalarGridSpec(
            num_scalar_prefetch=1,                                      # dropout seed
            grid=grid,
            in_specs=[
                pl.BlockSpec((tm_eff, H), lambda i, seed_ref: (i, 0)),  # x row tile
                _resident_spec((H, H), lambda i, seed_ref: (0, 0)),     # W^T, resident
                _resident_spec((1, H), lambda i, seed_ref: (0, 0)),     # bias, resident
            ],
            out_specs=pl.BlockSpec((tm_eff, H), lambda i, seed_ref: (i, 0)),
        ),
        compiler_params=pltpu.CompilerParams(
            dimension_semantics=("parallel",),
            vmem_limit_bytes=vmem_limit,
        ),
        cost_estimate=cost,
    )(seed, x2d, w_t, b2d)

    return out2d.reshape(B, S, H)


if __name__ == "__main__":
    # Small shapes consistent with the module: (batch, seq, hidden).
    B, S, H = 2, 8, 32

    key = jax.random.PRNGKey(0)
    k_x, k_w, k_b = jax.random.split(key, 3)
    hidden_states = jax.random.normal(k_x, (B, S, H), dtype=jnp.float32)
    # nn.Linear(H, H): weight (out, in) = (H, H), bias (H,)
    weight = jax.random.normal(k_w, (H, H), dtype=jnp.float32) * 0.02
    bias = jax.random.normal(k_b, (H,), dtype=jnp.float32) * 0.02

    ref = jnp.einsum("bsh,oh->bso", hidden_states, weight,
                     precision=jax.lax.Precision.HIGHEST) + bias

    # Inference path (hidden_dropout_prob = 0.0, the config default), exact f32 operands.
    out = timesformer_self_output(hidden_states, weight, bias, matmul_dtype=jnp.float32)
    out = jax.block_until_ready(out)
    assert out.shape == (B, S, H)
    assert jnp.allclose(out, ref, atol=1e-5, rtol=1e-5), \
        float(jnp.max(jnp.abs(out - ref)))

    # Default path: bf16 MXU operands with f32 accumulation.
    out_bf16 = jax.block_until_ready(timesformer_self_output(hidden_states, weight, bias))
    assert out_bf16.shape == (B, S, H)
    assert jnp.allclose(out_bf16, ref, atol=5e-2, rtol=5e-2)

    # Training path smoke test: dropout p=0.5 (inverted dropout via stateless hash).
    out_do = timesformer_self_output(hidden_states, weight, bias,
                                     dropout_prob=0.5, dropout_seed=123,
                                     matmul_dtype=jnp.float32)
    out_do = jax.block_until_ready(out_do)
    zero_frac = float(jnp.mean((out_do == 0.0).astype(jnp.float32)))
    assert 0.25 < zero_frac < 0.75, zero_frac
    kept = out_do != 0.0
    assert jnp.allclose(jnp.where(kept, out_do, 0.0),
                        jnp.where(kept, ref * 2.0, 0.0),
                        atol=1e-4, rtol=1e-4)

    print("KERNEL_OK")
</pallas_src>

<mosaic_0001>
module attributes {stable_mosaic.version = 11 : i64} {
  func.func @_self_output_kernel(%arg0: i32, %arg1: memref<1xi32, #tpu.memory_space<smem>>, %arg2: memref<8x32xf32, #tpu.memory_space<vmem>>, %arg3: memref<32x32xf32, #tpu.memory_space<vmem>>, %arg4: memref<1x32xf32, #tpu.memory_space<vmem>>, %arg5: memref<8x32xf32, #tpu.memory_space<vmem>>) attributes {dimension_semantics = [#tpu.dimension_semantics<parallel>], iteration_bounds = array<i64: 2>, scalar_prefetch = 1 : i64, scratch_operands = 0 : i64, tpu.core_type = #tpu.core_type<tc>, window_params = [{transform_indices = @transform_0, window_bounds = array<i64: 8, 32>}, {pipeline_mode = #tpu.pipeline_mode<synchronous>, transform_indices = @transform_1, window_bounds = array<i64: 32, 32>}, {pipeline_mode = #tpu.pipeline_mode<synchronous>, transform_indices = @transform_2, window_bounds = array<i64: 1, 32>}, {transform_indices = @transform_3, window_bounds = array<i64: 8, 32>}]} {
    %c0 = arith.constant 0 : index
    %c0_0 = arith.constant 0 : index
    %0 = vector.load %arg2[%c0, %c0_0] : memref<8x32xf32, #tpu.memory_space<vmem>>, vector<8x32xf32>
    %c0_1 = arith.constant 0 : index
    %c0_2 = arith.constant 0 : index
    %1 = vector.load %arg3[%c0_1, %c0_2] : memref<32x32xf32, #tpu.memory_space<vmem>>, vector<32x32xf32>
    %cst = arith.constant dense<0.000000e+00> : vector<8x32xf32>
    %2 = tpu.matmul %0, %1, %cst {dimension_numbers = #tpu.dot_dimension_numbers<[1], [0], [0], [1], [0, 0, 1, 1], [], []>, precision = #tpu.contract_precision<fp32>} : vector<8x32xf32>, vector<32x32xf32>, vector<8x32xf32> -> vector<8x32xf32>
    %c0_3 = arith.constant 0 : index
    %c0_4 = arith.constant 0 : index
    %3 = vector.load %arg4[%c0_3, %c0_4] : memref<1x32xf32, #tpu.memory_space<vmem>>, vector<1x32xf32>
    %4 = vector.broadcast %3 : vector<1x32xf32> to vector<8x32xf32>
    %5 = arith.addf %2, %4 : vector<8x32xf32>
    %c0_5 = arith.constant 0 : index
    %c0_6 = arith.constant 0 : index
    %6 = vector.load %arg5[%c0_5, %c0_6] : memref<8x32xf32, #tpu.memory_space<vmem>>, vector<8x32xf32>
    tpu.vector_store %arg5[%c0_5, %c0_6], %5 {strides = array<i32>} : memref<8x32xf32, #tpu.memory_space<vmem>>, vector<8x32xf32>,
    return
  }
  func.func @transform_0(%arg0: i32, %arg1: memref<1xi32, #tpu.memory_space<smem>>) -> (i32, i32) {
    %c0_i32 = arith.constant 0 : i32
    %c0_i32_0 = arith.constant 0 : i32
    return %arg0, %c0_i32 : i32, i32
  }
  func.func @transform_1(%arg0: i32, %arg1: memref<1xi32, #tpu.memory_space<smem>>) -> (i32, i32) {
    %c0_i32 = arith.constant 0 : i32
    %c0_i32_0 = arith.constant 0 : i32
    %c0_i32_1 = arith.constant 0 : i32
    return %c0_i32, %c0_i32_0 : i32, i32
  }
  func.func @transform_2(%arg0: i32, %arg1: memref<1xi32, #tpu.memory_space<smem>>) -> (i32, i32) {
    %c0_i32 = arith.constant 0 : i32
    %c0_i32_0 = arith.constant 0 : i32
    %c0_i32_1 = arith.constant 0 : i32
    return %c0_i32, %c0_i32_0 : i32, i32
  }
  func.func @transform_3(%arg0: i32, %arg1: memref<1xi32, #tpu.memory_space<smem>>) -> (i32, i32) {
    %c0_i32 = arith.constant 0 : i32
    %c0_i32_0 = arith.constant 0 : i32
    return %arg0, %c0_i32 : i32, i32
  }
}

</mosaic_0001>

<bundles_post_ra>
// kernel: tpu_custom_call.1
= control target key start
LH: loop header
LB: loop body
LE: loop exit
PB: predicated region body
PF: predicated region fallthrough
CT: control target
= control target key end

     0   :  { %10 = vsyncpa [#allocation5], 0  ;;  %s1410_s0 = inlined_call_operand.<no memory space> [shape: s32[1], index: 0, kind: input, shape index: {}]   ;;  %s1411_s1 = inlined_call_operand.hbm [shape: f32[16,32], index: 1, kind: input, shape index: {}]   ;;  %s1412_s2 = inlined_call_operand.hbm [shape: f32[32,32], index: 2, kind: input, shape index: {}]   ;;  %s1413_s3 = inlined_call_operand.vmem [shape: f32[1,32], index: 3, kind: input, shape index: {}]   ;;  %s1414_s4 = inlined_call_operand.hbm [shape: f32[16,32], index: 4, kind: output, shape index: {}]  }
   0x1   :  { %12 = vsyncpa [#allocation5 + $0x1], 0 }
   0x2   :  { %13 = vsyncpa [#allocation8], 0 }
   0x3   :  { %14 = vsyncpa [#allocation6], 0 }
   0x4   :  { %16 = vsyncpa [#allocation6 + $0x1], 0  ;;  %s1181_s15 = smov 0   ;;  %s1183_s0 = smov 0  }
   0x5   :  { %s1185_s16 = smov 0   ;;  %s1187_s17 = smov 0  }
   0x6 LB: > { %s1202_s18 = sadd.s32 4294967295, %s1146_s17   ;;  %s799_s19 = sadd.s32 4294967294, %s1146_s17   ;;  %s1146_s17 = sphi %s1187_s17, %s1434_s17   ;;  %s1142_s16 = sphi %s1185_s16, %s1433_s16   ;;  %s1138_s0 = sphi %s1183_s0, %s1432_s0   ;;  %s1134_s15 = sphi %s1181_s15, %s1431_s15  }
   0x7   : > { %p42_p0 = scmp.ne.s32.totalorder %s1138_s0, %s1134_s15  ;;  %p1415_p1 = scmp.eq.s32.totalorder %s1202_s18, 0 }
   0x8   : > { %p114_p3 = scmp.eq.s32.totalorder %s799_s19, 1  ;;  %p800_p5 = scmp.ge.s32.totalorder %s1146_s17, 1 }
   0x9   : > { %p1211_p4 = por %p1415_p1, %p42_p0  ;;  %p121_p7 = scmp.lt.s32.totalorder %s1146_s17, 3 }
   0xa   : > { %p1216_p6 = por %p114_p3, %p42_p0  ;;  %s1148_s23 = smov [#allocation7]  }
   0xb   : > { %s1418_s20 = scalar_select %p1211_p4, 1, 0 }
   0xc   : > { %s1419_s21 = scalar_select %p1216_p6, 1, 0 }
   0xd   : > { %p1221_p8 = pnand %p800_p5, %p121_p7  ;;  %s133_s24 = sshll.u32 %s1148_s23, 4  ;;  %s1225_s24 = int_to_ptr.vmem [resolvable:$true] %s133_s24 }
   0xe   : > { %s1237_s26 = sadd.s32 1, %s1146_s17   ;;  %s29_s27 = sadd.s32 1, %s1142_s16 }
   0xf   : > { %s1420_s22 = scalar_select %p1221_p8, 1, 0 }
  0x10   : > { %p964_p9 = pneg %p1221_p8  ;;  %s26_s28 = ssub.s32 %s1146_s17, %s1237_s26 }
  0x11   : > { %s1018_s5 = scalar_lea.hbm %s1412_s2, 512 }
  0x12   : > { %p1232_p11 = pnand %p964_p9, %p1415_p1  ;;  %p1019_p12 = scmp.ne.s32.totalorder %s1412_s2, %s1018_s5 }
  0x13   : > { %p1025_p5 = scmp.lt.u32.totalorder %s1018_s5, %s1412_s2 }
  0x14   : > { %p1020_p13 = pneg %p1232_p11 }
  0x16   : > { %p1021_p0 = pnand %p1020_p13, %p1019_p12 }
  0x18   : > { %p1022_p3 = pneg %p1021_p0 }
  0x1a   : > { %p1027_p7 = pnand %p1025_p5, %p1022_p3 }
  0x1c   : > { %1030 = shalt.err (!%p1027_p7)
}
  0x1d   : > { %s1031_s10 = scalar_lea.vmem %s1225_s24, 512  ;;  %p1039_p2 = scmp.lt.s32.totalorder %s1225_s24, %s1225_s24 }
  0x1e   : > { %p1032_p9 = scmp.ne.s32.totalorder %s1225_s24, %s1031_s10  ;;  %p1040_p6 = scmp.lt.s32.totalorder %s1031_s10, %s1031_s10 }
  0x20   : > { %p1034_p10 = pnand %p1032_p9, %p1020_p13  ;;  %p1041_p4 = por %p1040_p6, %p1039_p2 }
  0x22   : > { %p1035_p1 = pneg %p1034_p10 }
  0x24   : > { %p1042_p8 = pnand %p1041_p4, %p1035_p1 }
  0x26   : > { %1045 = shalt.err (!%p1042_p8)
}
  0x27   : > { %s1149_s11 = smov 128   ;;  %s1150_s12 = smov 8  }
  0x28   : > { %967 = dma.hbm_to_vmem [thread:$0]  (!%p1232_p11), %s1412_s2, 512, %s1225_s24, [#allocation8], %s1149_s11, %s1149_s11, %s1150_s12  }
  0x29   : > { %p27_p2 = scmp.eq.s32.totalorder %s26_s28, 0  ;;  %p36_p1 = scmp.ne.s32.totalorder %s1142_s16, %s1138_s0 }
  0x2a   : > { %p37_p4 = scmp.eq.s32.totalorder %s1146_s17, 0  ;;  %p977_p6 = scmp.lt.s32.totalorder %s1146_s17, 2 }
  0x2b   : > { %s1268_s19 = scalar_select %p27_p2, %s1142_s16, %s29_s27  }
  0x2c   : > { %p38_p8 = por %p37_p4, %p36_p1  ;;  %p1422_p10 = scmp.eq.s32.totalorder %s1202_s18, 1 }
  0x2d   : > { %s150_s29 = sand.u32 1, %s1142_s16   ;;  %s804_s30 = sshll.u32 %s1146_s17, 7 }
  0x2e   : > { %p1272_p12 = por %p1422_p10, %p36_p1  ;;  %s803_s5 = sshll.u32 %s150_s29, 3 }
  0x2f   : > { %s1281_s7 = scalar_lea.hbm %s1411_s1, %s804_s30  ;;  %s154_s24 = scalar_lea.vmem [#allocation4], %s803_s5 }
  0x30   : > { %s161_s27 = sshll.u32 %s154_s24, 4  ;;  %p1283_p11 = pnand %p977_p6, %p38_p8  ;;  %s1287_s27 = int_to_ptr.vmem [resolvable:$true] %s161_s27 }
  0x31   : > { %s151_s8 = scalar_lea.sflag [#allocation5], %s150_s29  ;;  %s1046_s9 = scalar_lea.hbm %s1281_s7, 128 }
  0x32   : > { %p1047_p13 = scmp.ne.s32.totalorder %s1281_s7, %s1046_s9  ;;  %p1048_p0 = pneg %p1283_p11 }
  0x33   : > { %s1051_s12 = scalar_lea.hbm %s1411_s1, 256  ;;  %p1052_p7 = scmp.lt.u32.totalorder %s1281_s7, %s1411_s1 }
  0x34   : > { %p1049_p3 = pnand %p1048_p0, %p1047_p13  ;;  %p1053_p9 = scmp.lt.u32.totalorder %s1051_s12, %s1046_s9 }
  0x35   : > { %p1055_p1 = scmp.lt.u32.totalorder %s1046_s9, %s1281_s7 }
  0x36   : > { %p1050_p5 = pneg %p1049_p3  ;;  %p1054_p2 = por %p1053_p9, %p1052_p7 }
  0x38   : > { %p1056_p4 = por %p1055_p1, %p1054_p2 }
  0x3a   : > { %p1057_p6 = pnand %p1056_p4, %p1050_p5 }
  0x3c   : > { %1060 = shalt.err (!%p1057_p6)
}
  0x3d   : > { %s1061_s29 = scalar_lea.vmem %s1287_s27, 128  ;;  %s1151_s30 = smov [#allocation4]  }
  0x3e   : > { %p1062_p8 = scmp.ne.s32.totalorder %s1287_s27, %s1061_s29  ;;  %s1066_s5 = sshll.u32 %s1151_s30, 4  ;;  %s1067_s5 = int_to_ptr.vmem [resolvable:$false] %s1066_s5 }
  0x3f   : > { %s1068_s25 = scalar_lea.vmem %s1067_s5, 256  ;;  %p1069_p3 = scmp.lt.s32.totalorder %s1287_s27, %s1067_s5 }
  0x40   : > { %p1064_p10 = pnand %p1062_p8, %p1048_p0  ;;  %p1070_p7 = scmp.lt.s32.totalorder %s1068_s25, %s1061_s29 }
  0x42   : > { %p1065_p13 = pneg %p1064_p10  ;;  %p1071_p9 = por %p1070_p7, %p1069_p3 }
  0x44   : > { %p1072_p2 = pnand %p1071_p9, %p1065_p13 }
  0x46   : > { %1075 = shalt.err (!%p1072_p2)
}
  0x47   : > { %971 = dma.hbm_to_vmem [thread:$0]  (!%p1283_p11), %s1281_s7, 128, %s1287_s27, %s151_s8  }
  0x48   : > { %p1425_p5 = scmp.ne.s32.totalorder %s1420_s22, 0 }
  0x49   : > { %s1317_s6 = sand.u32 (!%p1425_p5), 1, %s1138_s0   ;;  %p1426_p0 = scmp.ne.s32.totalorder (!%p1425_p5), %s1418_s20, 0 }
  0x4a   : > { %170 = sbr.rel (%p1425_p5) target bundleno = 345 (0x159), region = 32  ;;  %s806_s24 = sshll.u32 (!%p1425_p5), %s1317_s6, 3 }
  0x4b   : > { %s173_s9 = scalar_lea.sflag (!%p1425_p5), [#allocation5], %s1317_s6  ;;  %s176_s10 = scalar_lea.vmem (!%p1425_p5), [#allocation4], %s806_s24 }
  0x51   : > { %1121 = dma.done.wait (%p1426_p0), %s173_s9, 128  }
  0x52   : > { %1123 = vsyncadd (%p1426_p0), %s173_s9, 4294967168  ;;  %p1427_p11 = scmp.eq.s32.totalorder %s1202_s18, 0 }
  0x54   : > { %1125 = dma.done.wait (%p1427_p11), [#allocation8], 512   ;;  %p1428_p1 = pmov %p1427_p11 }
  0x55   : > { %v1152_v0 = vmov 0.0|0.0   ;;  %vm1153_vm0 = vmmov 0   ;;  %v1154_v1 = vmov 0.0   ;;  %vm215_vm1 = vcmask 261120   ;;  %v204_v2 = vld [vmem:[#allocation7] sm:$0xff]  ;;  %v205_v3 = vld [vmem:[#allocation7 + $0x8] sm:$0xff] }
  0x56   : > { %1127 = vsyncadd (%p1428_p1), [#allocation8], 4294966784  ;;  %910 = vmatprep.subr.bf16.mxu1 %v1152_v0  ;;  %928 = vmatprep.subr.bf16.mxu0 %v1152_v0  ;;  %v206_v4 = vld [vmem:[#allocation7 + $0x10] sm:$0xff]  ;;  %v220_v5 = vand.u32 4294901760, %v204_v2  ;;  %v223_v6 = vand.u32 4294901760, %v205_v3  ;;  %v207_v7 = vld [vmem:[#allocation7 + $0x18] sm:$0xff] }
  0x57   : > { %852 = vmatprep.mubr.msk.f32.mxu1 %vm1153_vm0, %v1154_v1  ;;  %885 = vmatprep.mubr.msk.f32.mxu0 %vm1153_vm0, %v1154_v1  ;;  %v226_v8 = vand.u32 4294901760, %v206_v4  ;;  %v203_v9 = vld [vmem:[%s176_s10] sm:$0xff]  ;;  %v229_v10 = vand.u32 4294901760, %v207_v7  ;;  %s811_s7 = sshll.u32 %s1202_s18, 7  ;;  %s202_s27 = scalar_lea.vmem [#allocation9], %s806_s24 }
  0x58   : > { %v217_v11 = vsel %vm215_vm1, %v203_v9, 0  ;;  %v911_v12 = vpack.c.bf16 %v223_v6, %v220_v5  ;;  %v300_v13 = vsub.f32 %v204_v2, %v220_v5  ;;  %v307_v14 = vsub.f32 %v205_v3, %v223_v6  ;;  %v809_v41 = vld [vmem:[%s1413_s3] ss:$0 sm:$0xff]  ;;  %s719_s28 = sshll.u32 %s202_s27, 4  ;;  %s1365_s12 = scalar_lea.hbm %s1414_s4, %s811_s7  ;;  %s1367_s28 = int_to_ptr.vmem [resolvable:$true] %s719_s28 }
  0x59   : > { %v314_v15 = vsub.f32 %v206_v4, %v226_v8  ;;  %v321_v16 = vsub.f32 %v207_v7, %v229_v10  ;;  %v288_v17 = vand.u32 4294901760, %v217_v11  ;;  %v914_v18 = vpack.c.bf16 %v229_v10, %v226_v8  ;;  %s706_s13 = scalar_lea.sflag [#allocation6], %s1317_s6  ;;  %s1076_s18 = scalar_lea.vmem %s1367_s28, 128 }
  0x5a   : > { %912 = vmatpush3.bf16.msra.mxu1 %v911_v12  ;;  %930 = vmatpush3.bf16.msra.mxu0 %v911_v12  ;;  %v301_v19 = vand.u32 4294901760, %v300_v13  ;;  %v308_v20 = vand.u32 4294901760, %v307_v14  ;;  %v923_v39 = vpack.c.bf16 %v307_v14, %v300_v13  ;;  %p1077_p4 = scmp.ne.s32.totalorder %s1367_s28, %s1076_s18  ;;  %s1155_s14 = smov [#allocation9]  }
  0x5b   : > { %v315_v21 = vand.u32 4294901760, %v314_v15  ;;  %913 = vmatprep.subr.bf16.mxu1 %v1152_v0  ;;  %931 = vmatprep.subr.bf16.mxu0 %v1152_v0  ;;  %v289_v22 = vsub.f32 %v217_v11, %v288_v17  ;;  %v322_v23 = vand.u32 4294901760, %v321_v16  ;;  %v926_v40 = vpack.c.bf16 %v321_v16, %v314_v15  ;;  %s1080_s29 = sshll.u32 %s1155_s14, 4  ;;  %s1081_s29 = int_to_ptr.vmem [resolvable:$false] %s1080_s29 }
  0x5c   : > { %v302_v24 = vsub.f32 %v300_v13, %v301_v19  ;;  %v309_v25 = vsub.f32 %v307_v14, %v308_v20  ;;  %v935_v31 = vpack.c.bf16 %v308_v20, %v301_v19  ;;  %p1078_p6 = pnand %p1077_p4, %p1272_p12  ;;  %s1082_s30 = scalar_lea.vmem %s1081_s29, 256 }
  0x5d   : > { %v316_v26 = vsub.f32 %v314_v15, %v315_v21  ;;  %v290_v27 = vand.u32 4294901760, %v289_v22  ;;  %v323_v28 = vsub.f32 %v321_v16, %v322_v23  ;;  %v938_v37 = vpack.c.bf16 %v322_v23, %v315_v21  ;;  %p1083_p10 = scmp.lt.s32.totalorder %s1367_s28, %s1081_s29  ;;  %p1084_p13 = scmp.lt.s32.totalorder %s1082_s30, %s1076_s18 }
  0x5e   : > { %915 = vmatpush3.bf16.msra.mxu1 %v914_v18  ;;  %933 = vmatpush3.bf16.msra.mxu0 %v914_v18  ;;  %v303_v29 = vand.u32 4294901760, %v302_v24  ;;  %v310_v30 = vand.u32 4294901760, %v309_v25  ;;  %p1079_p8 = pneg %p1078_p6 }
  0x5f   : > { %v291_v32 = vsub.f32 %v289_v22, %v290_v27  ;;  %916 = vmatprep.subr.bf16.mxu1 %v1152_v0  ;;  %934 = vmatprep.subr.bf16.mxu0 %v1152_v0  ;;  %v317_v34 = vand.u32 4294901760, %v316_v26  ;;  %v324_v35 = vand.u32 4294901760, %v323_v28  ;;  %p1085_p3 = por %p1084_p13, %p1083_p10 }
  0x60   : > { %v917_v33 = vpack.c.bf16 %v310_v30, %v303_v29 }
  0x61   : > { %v292_v36 = vand.u32 4294901760, %v291_v32  ;;  %886 = vmatmul.mubr.f32.vlgmr.msra.gmra.mrb[0].mxu0 %v290_v27  ;;  %v920_v38 = vpack.c.bf16 %v324_v35, %v317_v34  ;;  %p1086_p7 = pnand %p1085_p3, %p1079_p8 }
  0x62   : > { %936 = vmatpush3.bf16.msra.mxu0 %v935_v31  ;;  %896 = vmatprep.mubr.msk.f32.mxu0 %vm1153_vm0, %v1154_v1 }
  0x63   : > { %853 = vmatmul.mubr.f32.vlgmr.msra.gmra.mrb[0].mxu1 %v292_v36  ;;  %937 = vmatprep.subr.bf16.mxu0 %v1152_v0 }
  0x64   : > { %918 = vmatpush3.bf16.msra.mxu1 %v917_v33  ;;  %863 = vmatprep.mubr.msk.f32.mxu1 %vm1153_vm0, %v1154_v1 }
  0x65   : > { %919 = vmatprep.subr.bf16.mxu1 %v1152_v0 }
  0x66   : > { %939 = vmatpush3.bf16.msra.mxu0 %v938_v37 }
  0x67   : > { %940 = vmatprep.subr.bf16.mxu0 %v1152_v0 }
  0x68   : > { %921 = vmatpush3.bf16.msra.mxu1 %v920_v38 }
  0x69   : > { %922 = vmatprep.subr.bf16.mxu1 %v1152_v0  ;;  %897 = vmatmul.mubr.f32.vlgmr.msra.gmra.mrb[0].mxu0 %v288_v17 }
  0x6a   : > { %942 = vmatpush3.bf16.msra.mxu0 %v911_v12  ;;  %907 = vmatprep.mubr.msk.f32.mxu0 %vm1153_vm0, %v1154_v1 }
  0x6b   : > { %864 = vmatmul.mubr.f32.vlgmr.msra.gmra.mrb[0].mxu1 %v288_v17  ;;  %943 = vmatprep.subr.bf16.mxu0 %v1152_v0 }
  0x6c   : > { %924 = vmatpush3.bf16.msra.mxu1 %v923_v39  ;;  %874 = vmatprep.mubr.msk.f32.mxu1 %vm1153_vm0, %v1154_v1 }
  0x6d   : > { %925 = vmatprep.subr.bf16.mxu1 %v1152_v0 }
  0x6e   : > { %945 = vmatpush3.bf16.msra.mxu0 %v914_v18 }
  0x70   : > { %927 = vmatpush3.bf16.msra.mxu1 %v926_v40 }
  0x71   : > { %908 = vmatmul.mubr.f32.vlgmr.msra.gmra.mrb[0].mxu0 %v288_v17 }
  0x73   : > { %875 = vmatmul.mubr.f32.vlgmr.msra.gmra.mrb[0].mxu1 %v289_v22 }
 0x144   : > { %v700_v42 = vpop.f32.mrb[0].mxu0 }
 0x145   : > { %v909_v43 = vpop.f32.mrb[1].mxu0 }
 0x146   : > { %v465_v44 = vpop.f32.mrb[0].mxu1 }
 0x147   : > { %v946_v45 = vadd.f32 %v809_v41, %v465_v44  ;;  %v876_v46 = vpop.f32.mrb[1].mxu1 }
 0x149   : > { %v947_v47 = vadd.f32 %v946_v45, %v700_v42 }
 0x14b   : > { %704 = vst.msk [vmem:[%s202_s27] sm:$0xff] %vm215_vm1, %v947_v47 }
 0x14c   : > { %1089 = shalt.err (!%p1086_p7)
}
 0x14d   : > { %s1090_s5 = scalar_lea.hbm %s1365_s12, 128  ;;  %s1094_s24 = scalar_lea.hbm %s1414_s4, 256 }
 0x14e   : > { %p1091_p9 = scmp.ne.s32.totalorder %s1365_s12, %s1090_s5  ;;  %p1095_p0 = scmp.lt.u32.totalorder %s1365_s12, %s1414_s4 }
 0x14f   : > { %p1096_p11 = scmp.lt.u32.totalorder %s1094_s24, %s1090_s5  ;;  %p1098_p4 = scmp.lt.u32.totalorder %s1090_s5, %s1365_s12 }
 0x150   : > { %p1092_p2 = pnand %p1091_p9, %p1272_p12 }
 0x151   : > { %p1097_p1 = por %p1096_p11, %p1095_p0 }
 0x152   : > { %p1093_p5 = pneg %p1092_p2 }
 0x153   : > { %p1099_p6 = por %p1098_p4, %p1097_p1 }
 0x155   : > { %p1100_p8 = pnand %p1099_p6, %p1093_p5 }
 0x157   : > { %1103 = shalt.err (!%p1100_p8)
}
 0x158   : > { %962 = dma.vmem_to_hbm [thread:$0]  (%p1272_p12), %s1367_s28, 128, %s1365_s12, %s706_s13  }
 0x159 PF: > { %s731_s20 = sand.u32 1, %s1134_s15   ;;  %p1429_p10 = scmp.ne.s32.totalorder %s1419_s21, 0 }
 0x15a   : > { %p1430_p13 = scmp.ge.s32.totalorder %s1146_s17, 2  ;;  %s732_s22 = scalar_lea.sflag [#allocation6], %s731_s20 }
 0x15c   : > { %p973_p3 = pnand %p1430_p13, %p1429_p10 }
 0x15e   : > { %1129 = dma.done.wait (!%p973_p3), %s732_s22, 128  }
 0x15f   : > { %1131 = vsyncadd (!%p973_p3), %s732_s22, 4294967168  ;;  %p19_p7 = scmp.ge.s32.totalorder %s1237_s26, 4   ;;  %s1431_s15 = smov %s1138_s0 }
 0x160   : > { %s1432_s0 = smov %s1142_s16  ;;  %s1433_s16 = smov %s1268_s19 }
 0x161   : > { %s1434_s17 = smov %s1237_s26  ;;  %21 = sbr.rel (!%p19_p7) target bundleno = 6 (0x6), region = 81 }
 0x168   :  { %737 = vsyncpa [#allocation5], 1 }
 0x169   :  { %739 = vsyncpa [#allocation5 + $0x1], 1 }
 0x16a   :  { %740 = vsyncpa [#allocation8], 1 }
 0x16b   :  { %741 = vsyncpa [#allocation6], 1 }
 0x16c   :  { %743 = vsyncpa [#allocation6 + $0x1], 1 }

</bundles_post_ra>
